<compile_context>
chip_gen: v6e
topology: v6e:2x2x1
jax: 0.10.0
libtpu: 0.0.40
codegen_flags: <defaults>
</compile_context>

<pallas_src>
import jax
import jax.numpy as jnp
from jax.experimental import pallas as pl
from jax.experimental.pallas import tpu as pltpu

ALPHA = 0.25
GAMMA = 2.0
REDUCTION = "mean"  # 'mean' | 'sum'
# TODO(synk): reduction='none' (elementwise output) is not wired up; the module
# default is 'mean'.

LANES = 128
SUBLANES = 8
MAX_TILE_ROWS = 2048  # 2048x128 f32 = 1 MiB per input block (x2 inputs x2 bufs = 4 MiB)


def _make_focal_kernel(tile_rows, total_rows, needs_row_mask):
    def kernel(x_ref, t_ref, out_ref):
        x = x_ref[...].astype(jnp.float32)
        t = t_ref[...].astype(jnp.float32)

        # nn.BCELoss(reduction='none'): -(t*log(x) + (1-t)*log(1-x)), with the
        # log terms clamped at -100 (PyTorch's internal clamp).
        log_x = jnp.maximum(jnp.log(x), -100.0)
        log_1mx = jnp.maximum(jnp.log(1.0 - x), -100.0)
        bce = -(t * log_x + (1.0 - t) * log_1mx)

        # pt = where(t==1, x, 1-x);  q = 1 - pt
        q = jnp.where(t == 1.0, 1.0 - x, x)
        if GAMMA == 2.0:
            w = q * q                      # explicit square: no pow / EUP work
        else:
            w = q ** GAMMA
        contrib = w * bce                  # alpha, 1/N applied to final scalar

        if needs_row_mask:
            row = pl.program_id(0) * tile_rows + jax.lax.broadcasted_iota(
                jnp.int32, (tile_rows, LANES), 0)
            contrib = jnp.where(row < total_rows, contrib, 0.0)

        # Per-block partial sum: mostly VALU vreg adds + one small sublane
        # reduce; cross-block reduction happens once in the wrapper.
        partial = jnp.sum(contrib, axis=0, keepdims=True)   # (1, 128)
        out_ref[...] = partial[None]                         # (1, 1, 128)

    return kernel


def focal_loss(inputs, targets):
    """inputs, targets: matching shapes (e.g. NCHW probabilities in [0,1])."""
    assert inputs.shape == targets.shape
    n = inputs.size

    x = inputs.reshape(-1)
    t = targets.reshape(-1)
    pad = (-n) % (SUBLANES * LANES)
    if pad:
        # Zero pad is exactly neutral: x=0,t=0 -> bce=0 (via the -100 clamp)
        # and focal weight q*q = 0.
        x = jnp.pad(x, (0, pad))
        t = jnp.pad(t, (0, pad))

    rows = (n + pad) // LANES            # multiple of 8
    x = x.reshape(rows, LANES)
    t = t.reshape(rows, LANES)

    tile_rows = min(MAX_TILE_ROWS, rows)
    num_blocks = pl.cdiv(rows, tile_rows)
    needs_row_mask = (rows % tile_rows) != 0

    partials = pl.pallas_call(
        _make_focal_kernel(tile_rows, rows, needs_row_mask),
        out_shape=jax.ShapeDtypeStruct((num_blocks, 1, LANES), jnp.float32),
        grid_spec=pltpu.PrefetchScalarGridSpec(
            num_scalar_prefetch=0,
            grid=(num_blocks,),
            in_specs=[
                pl.BlockSpec((tile_rows, LANES), lambda i: (i, 0)),
                pl.BlockSpec((tile_rows, LANES), lambda i: (i, 0)),
            ],
            out_specs=pl.BlockSpec((1, 1, LANES), lambda i: (i, 0, 0)),
        ),
        compiler_params=pltpu.CompilerParams(
            dimension_semantics=("parallel",),
            vmem_limit_bytes=32 * 1024 * 1024,
        ),
    )(x, t)

    total = jnp.float32(ALPHA) * jnp.sum(partials)
    if REDUCTION == "mean":
        return total / jnp.float32(n)
    return total  # 'sum'


def focal_loss_ref(inputs, targets):
    x = inputs.astype(jnp.float32)
    t = targets.astype(jnp.float32)
    bce = -(t * jnp.maximum(jnp.log(x), -100.0)
            + (1.0 - t) * jnp.maximum(jnp.log(1.0 - x), -100.0))
    pt = jnp.where(t == 1.0, x, 1.0 - x)
    fl = ALPHA * (1.0 - pt) ** GAMMA * bce
    return fl.mean() if REDUCTION == "mean" else fl.sum()


if __name__ == "__main__":
    key = jax.random.PRNGKey(0)

    # Primary test: small NCHW probabilities + hard binary targets.
    k1, k2, k3, k4 = jax.random.split(key, 4)
    shape = (2, 4, 16, 16)
    inputs = jax.nn.sigmoid(jax.random.normal(k1, shape, jnp.float32))
    targets = (jax.random.uniform(k2, shape) > 0.5).astype(jnp.float32)

    out = focal_loss(inputs, targets)
    jax.block_until_ready(out)
    ref = focal_loss_ref(inputs, targets)
    assert jnp.allclose(out, ref, rtol=1e-5, atol=1e-6), (out, ref)

    # Secondary test: non-1024-multiple size + multi-block partial tail
    # (exercises the zero-pad and the in-kernel row mask paths).
    shape2 = (4, 16, 80, 80)  # 409600 elements -> 3200 rows, 2 blocks, ragged
    inputs2 = jax.nn.sigmoid(jax.random.normal(k3, shape2, jnp.float32))
    targets2 = (jax.random.uniform(k4, shape2) > 0.5).astype(jnp.float32)

    out2 = focal_loss(inputs2, targets2)
    jax.block_until_ready(out2)
    ref2 = focal_loss_ref(inputs2, targets2)
    assert jnp.allclose(out2, ref2, rtol=1e-5, atol=1e-6), (out2, ref2)

    print("KERNEL_OK")
</pallas_src>

<mosaic_0001>
module attributes {stable_mosaic.version = 11 : i64} {
  func.func @kernel(%arg0: i32, %arg1: memref<16x128xf32, #tpu.memory_space<vmem>>, %arg2: memref<16x128xf32, #tpu.memory_space<vmem>>, %arg3: memref<1x1x128xf32, #tpu.memory_space<vmem>>) attributes {dimension_semantics = [#tpu.dimension_semantics<parallel>], iteration_bounds = array<i64: 1>, scalar_prefetch = 0 : i64, scratch_operands = 0 : i64, tpu.core_type = #tpu.core_type<tc>, window_params = [{transform_indices = @transform_0, window_bounds = array<i64: 16, 128>}, {transform_indices = @transform_1, window_bounds = array<i64: 16, 128>}, {transform_indices = @transform_2, window_bounds = array<i64: 1, 1, 128>}]} {
    %c0 = arith.constant 0 : index
    %c0_0 = arith.constant 0 : index
    %0 = vector.load %arg1[%c0, %c0_0] : memref<16x128xf32, #tpu.memory_space<vmem>>, vector<16x128xf32>
    %c0_1 = arith.constant 0 : index
    %c0_2 = arith.constant 0 : index
    %1 = vector.load %arg2[%c0_1, %c0_2] : memref<16x128xf32, #tpu.memory_space<vmem>>, vector<16x128xf32>
    %2 = math.log %0 : vector<16x128xf32>
    %cst = arith.constant -1.000000e+02 : f32
    %3 = vector.broadcast %cst : f32 to vector<16x128xf32>
    %4 = arith.maximumf %2, %3 : vector<16x128xf32>
    %cst_3 = arith.constant 1.000000e+00 : f32
    %5 = vector.broadcast %cst_3 : f32 to vector<16x128xf32>
    %6 = arith.subf %5, %0 : vector<16x128xf32>
    %7 = math.log %6 : vector<16x128xf32>
    %cst_4 = arith.constant -1.000000e+02 : f32
    %8 = vector.broadcast %cst_4 : f32 to vector<16x128xf32>
    %9 = arith.maximumf %7, %8 : vector<16x128xf32>
    %10 = arith.mulf %1, %4 : vector<16x128xf32>
    %cst_5 = arith.constant 1.000000e+00 : f32
    %11 = vector.broadcast %cst_5 : f32 to vector<16x128xf32>
    %12 = arith.subf %11, %1 : vector<16x128xf32>
    %13 = arith.mulf %12, %9 : vector<16x128xf32>
    %14 = arith.addf %10, %13 : vector<16x128xf32>
    %cst_6 = arith.constant 0.000000e+00 : f32
    %15 = vector.broadcast %cst_6 : f32 to vector<16x128xf32>
    %16 = arith.subf %15, %14 : vector<16x128xf32>
    %cst_7 = arith.constant 1.000000e+00 : f32
    %17 = vector.broadcast %cst_7 : f32 to vector<16x128xf32>
    %18 = arith.cmpf oeq, %1, %17 : vector<16x128xf32>
    %cst_8 = arith.constant 1.000000e+00 : f32
    %19 = vector.broadcast %cst_8 : f32 to vector<16x128xf32>
    %20 = arith.subf %19, %0 : vector<16x128xf32>
    %21 = arith.select %18, %20, %0 : vector<16x128xi1>, vector<16x128xf32>
    %22 = arith.mulf %21, %21 : vector<16x128xf32>
    %23 = arith.mulf %22, %16 : vector<16x128xf32>
    %cst_9 = arith.constant dense<0.000000e+00> : vector<128xf32>
    %24 = vector.multi_reduction <add>, %23, %cst_9 [0] : vector<16x128xf32> to vector<128xf32>
    %25 = vector.shape_cast %24 : vector<128xf32> to vector<1x128xf32>
    %26 = vector.shape_cast %25 : vector<1x128xf32> to vector<1x1x128xf32>
    %c0_10 = arith.constant 0 : index
    %c0_11 = arith.constant 0 : index
    %c0_12 = arith.constant 0 : index
    %27 = vector.load %arg3[%c0_10, %c0_11, %c0_12] : memref<1x1x128xf32, #tpu.memory_space<vmem>>, vector<1x1x128xf32>
    tpu.vector_store %arg3[%c0_10, %c0_11, %c0_12], %26 {strides = array<i32>} : memref<1x1x128xf32, #tpu.memory_space<vmem>>, vector<1x1x128xf32>,
    return
  }
  func.func @transform_0(%arg0: i32) -> (i32, i32) {
    %c0_i32 = arith.constant 0 : i32
    %c0_i32_0 = arith.constant 0 : i32
    return %arg0, %c0_i32 : i32, i32
  }
  func.func @transform_1(%arg0: i32) -> (i32, i32) {
    %c0_i32 = arith.constant 0 : i32
    %c0_i32_0 = arith.constant 0 : i32
    return %arg0, %c0_i32 : i32, i32
  }
  func.func @transform_2(%arg0: i32) -> (i32, i32, i32) {
    %c0_i32 = arith.constant 0 : i32
    %c0_i32_0 = arith.constant 0 : i32
    %c0_i32_1 = arith.constant 0 : i32
    return %arg0, %c0_i32, %c0_i32_0 : i32, i32, i32
  }
}

</mosaic_0001>

<bundles_post_ra>
// kernel: tpu_custom_call.1
= control target key start
LH: loop header
LB: loop body
LE: loop exit
PB: predicated region body
PF: predicated region fallthrough
CT: control target
= control target key end

     0   :  { %7 = vsyncpa [#allocation3], 0  ;;  %s208_s0 = inlined_call_operand.hbm [shape: f32[16,128], index: 0, kind: input, shape index: {}]   ;;  %s209_s1 = inlined_call_operand.hbm [shape: f32[16,128], index: 1, kind: input, shape index: {}]   ;;  %s210_s2 = inlined_call_operand.hbm [shape: f32[1,1,128], index: 2, kind: output, shape index: {}]  }
   0x1   :  { %8 = vsyncpa [#allocation6], 0 }
   0x2   :  { %9 = vsyncpa [#allocation4], 0  ;;  %s179_s9 = smov [#allocation2]  }
   0x3   :  { %s15_s10 = sshll.u32 %s179_s9, 4  ;;  %s16_s10 = int_to_ptr.vmem [resolvable:$true] %s15_s10 }
   0x4   :  { %s121_s11 = scalar_lea.vmem %s16_s10, 256  ;;  %p126_p1 = scmp.lt.s32.totalorder %s16_s10, %s16_s10 }
   0x5   :  { %p122_p0 = scmp.ne.s32.totalorder %s16_s10, %s121_s11  ;;  %p127_p2 = scmp.lt.s32.totalorder %s121_s11, %s121_s11 }
   0x7   :  { %p128_p3 = por %p127_p2, %p126_p1 }
   0x9   :  { %p129_p4 = pnand %p128_p3, %p122_p0 }
   0xb   :  { %132 = shalt.err (!%p129_p4)
}
   0xc   :  { %s180_s12 = smov 128   ;;  %s181_s13 = smov 8  }
   0xd   :  { %21 = dma.hbm_to_vmem [thread:$0]  %s208_s0, 256, %s16_s10, [#allocation3], %s180_s12, %s180_s12, %s181_s13  }
   0xe   :  { %s182_s16 = smov [#allocation5]  }
   0xf   :  { %s27_s17 = sshll.u32 %s182_s16, 4  ;;  %s28_s17 = int_to_ptr.vmem [resolvable:$true] %s27_s17 }
  0x10   :  { %s141_s18 = scalar_lea.vmem %s28_s17, 256  ;;  %p146_p6 = scmp.lt.s32.totalorder %s28_s17, %s28_s17 }
  0x11   :  { %p142_p5 = scmp.ne.s32.totalorder %s28_s17, %s141_s18  ;;  %p147_p7 = scmp.lt.s32.totalorder %s141_s18, %s141_s18 }
  0x13   :  { %p148_p8 = por %p147_p7, %p146_p6 }
  0x15   :  { %p149_p9 = pnand %p148_p8, %p142_p5 }
  0x17   :  { %152 = shalt.err (!%p149_p9)
}
  0x18   :  { %33 = dma.hbm_to_vmem [thread:$0]  %s209_s1, 256, %s28_s17, [#allocation6], %s180_s12, %s180_s12, %s181_s13  }
  0x19   :  { %173 = dma.done.wait [#allocation3], 256  }
  0x1a   :  { %174 = vsyncadd [#allocation3], 4294967040 }
  0x1b   :  { %175 = dma.done.wait [#allocation6], 256  }
  0x1c   :  { %176 = vsyncadd [#allocation6], 4294967040  ;;  %v40_v0 = vld [vmem:[#allocation2] sm:$0xff]  ;;  %v41_v1 = vld [vmem:[#allocation2 + $0x8] sm:$0xff]  ;;  %s183_s0 = smov [#allocation7]  }
  0x1d   :  { %105 = vlog2.f32 %v40_v0  ;;  %v50_v2 = vsub.f32 1.0, %v40_v0  ;;  %v51_v3 = vsub.f32 1.0, %v41_v1  ;;  %v42_v5 = vld [vmem:[#allocation5] sm:$0xff]  ;;  %v43_v7 = vld [vmem:[#allocation5 + $0x8] sm:$0xff]  ;;  %s90_s1 = sshll.u32 %s183_s0, 4  ;;  %s91_s1 = int_to_ptr.vmem [resolvable:$true] %s90_s1 }
  0x1e   :  { %107 = vlog2.f32 %v41_v1  ;;  %v60_v14 = vsub.f32 1.0, %v42_v5  ;;  %vm68_vm0 = vcmp.eq.f32.partialorder %v42_v5, 1.0  ;;  %v61_v17 = vsub.f32 1.0, %v43_v7  ;;  %s153_s21 = scalar_lea.vmem %s91_s1, 16  ;;  %s157_s22 = scalar_lea.vmem %s91_s1, 32 }
  0x1f   :  { %109 = vlog2.f32 %v50_v2  ;;  %vm69_vm1 = vcmp.eq.f32.partialorder %v43_v7, 1.0  ;;  %v70_v22 = vsel %vm68_vm0, %v50_v2, %v40_v0  ;;  %p154_p10 = scmp.ne.s32.totalorder %s91_s1, %s153_s21  ;;  %p158_p11 = scmp.lt.s32.totalorder %s91_s1, %s91_s1 }
  0x20   :  { %111 = vlog2.f32 %v51_v3  ;;  %v71_v24 = vsel %vm69_vm1, %v51_v3, %v41_v1  ;;  %v72_v27 = vmul.f32 %v70_v22, %v70_v22  ;;  %p159_p12 = scmp.lt.s32.totalorder %s157_s22, %s153_s21 }
  0x21   :  { %v73_v29 = vmul.f32 %v71_v24, %v71_v24 }
  0x22   :  { %p160_p13 = por %p159_p12, %p158_p11 }
  0x24   :  { %p161_p0 = pnand %p160_p13, %p154_p10 }
  0x2a   :  { %v106_v4 = vpop.eup %105 }
  0x2b   :  { %v108_v6 = vpop.eup %107  ;;  %v45_v8 = vmul.f32 0.6931472, %v106_v4 }
  0x2c   :  { %v110_v9 = vpop.eup %109  ;;  %v47_v10 = vmul.f32 0.6931472, %v108_v6 }
  0x2d   :  { %v112_v11 = vpop.eup %111  ;;  %v48_v12 = vmax.f32 %v45_v8, -100.0  ;;  %v53_v13 = vmul.f32 0.6931472, %v110_v9 }
  0x2e   :  { %v49_v15 = vmax.f32 %v47_v10, -100.0  ;;  %v55_v16 = vmul.f32 0.6931472, %v112_v11 }
  0x2f   :  { %v56_v18 = vmax.f32 %v53_v13, -100.0  ;;  %v58_v19 = vmul.f32 %v48_v12, %v42_v5 }
  0x30   :  { %v57_v20 = vmax.f32 %v55_v16, -100.0  ;;  %v59_v21 = vmul.f32 %v49_v15, %v43_v7 }
  0x31   :  { %v62_v23 = vmul.f32 %v60_v14, %v56_v18 }
  0x32   :  { %v63_v25 = vmul.f32 %v61_v17, %v57_v20 }
  0x33   :  { %v64_v26 = vadd.f32 %v62_v23, %v58_v19 }
  0x34   :  { %v65_v28 = vadd.f32 %v63_v25, %v59_v21 }
  0x35   :  { %v66_v30 = vsub.f32 0.0, %v64_v26 }
  0x36   :  { %v67_v31 = vsub.f32 0.0, %v65_v28 }
  0x37   :  { %v74_v32 = vmul.f32 %v72_v27, %v66_v30 }
  0x38   :  { %v75_v33 = vmul.f32 %v73_v29, %v67_v31 }
  0x3a   :  { %v76_v34 = vadd.f32 %v75_v33, %v74_v32 }
  0x3c   :  { %v77_v35 = vrot.slane %v76_v34, 4 }
  0x3e   :  { %v78_v36 = vadd.f32 %v77_v35, %v76_v34 }
  0x40   :  { %v79_v37 = vrot.slane %v78_v36, 2 }
  0x42   :  { %v80_v38 = vadd.f32 %v79_v37, %v78_v36 }
  0x44   :  { %v81_v39 = vrot.slane %v80_v38, 1 }
  0x46   :  { %v82_v40 = vadd.f32 %v81_v39, %v80_v38 }
  0x48   :  { %83 = vst [vmem:[#allocation7] sm:$0x1] %v82_v40 }
  0x49   :  { %164 = shalt.err (!%p161_p0)
}
  0x4a   :  { %93 = dma.vmem_to_hbm [thread:$0]  %s91_s1, 16, %s210_s2, [#allocation4]  }
  0x4b   :  { %177 = dma.done.wait [#allocation4], 16  }
  0x4c   :  { %178 = vsyncadd [#allocation4], 4294967280 }
  0x4d   :  { %97 = vsyncpa [#allocation3], 1 }
  0x4e   :  { %98 = vsyncpa [#allocation6], 1 }
  0x4f   :  { %99 = vsyncpa [#allocation4], 1 }

</bundles_post_ra>
